<compile_context>
chip_gen: v7x
topology: tpu7x:2x2x1
jax: 0.10.0
libtpu: 0.0.40
codegen_flags: <defaults>
</compile_context>

<pallas_src>
import functools

import jax
import jax.numpy as jnp
from jax.experimental import pallas as pl
from jax.experimental.pallas import tpu as pltpu


def _round_up(a: int, b: int) -> int:
    return (a + b - 1) // b * b


def pair_score_kernel(x_ref, w1_ref, b1_ref, w2_ref, b2_ref, w3_ref, b3_ref,
                      labels_ref, clsw_ref, logits_ref, partials_ref,
                      *, n_valid: int, tile_rows: int):
    # ---- MLP hot path: three MXU matmuls + ReLU (Dropout = identity) ----
    x = x_ref[...]                                                          # [TM, E] f32
    h1 = jnp.dot(x, w1_ref[...], preferred_element_type=jnp.float32) + b1_ref[...]
    h1 = jnp.maximum(h1, 0.0)
    h2 = jnp.dot(h1, w2_ref[...], preferred_element_type=jnp.float32) + b2_ref[...]
    h2 = jnp.maximum(h2, 0.0)
    logits = jnp.dot(h2, w3_ref[...], preferred_element_type=jnp.float32) + b3_ref[...]
    logits_ref[...] = logits                                                # [TM, 128] lane-dense store

    # ---- Weighted 2-class CE, closed form (only columns 0 and 1 are real) ----
    # nll_i = softplus(-(2*y_i - 1) * (l1_i - l0_i)),  weight_i = class_w[y_i]
    d = logits[:, 1:2] - logits[:, 0:1]                                     # [TM, 1]
    labels = labels_ref[...]                                                # [TM, 1] int32
    sign = (2 * labels - 1).astype(jnp.float32)
    t = -sign * d
    nll = jnp.maximum(t, 0.0) + jnp.log(1.0 + jnp.exp(-jnp.abs(t)))         # stable softplus (VPU+EUP)
    w_row = jnp.where(labels == 1, clsw_ref[1], clsw_ref[0])                # class weights from SMEM

    # Mask rows past the true N (row padding from tiling).
    row = pl.program_id(0) * tile_rows + jax.lax.broadcasted_iota(
        jnp.int32, (tile_rows, 1), 0)
    w_row = jnp.where(row < n_valid, w_row, 0.0)

    # Per-tile partials: [sum(w*nll), sum(w)]  (final divide in the wrapper).
    contrib = jnp.concatenate([w_row * nll, w_row], axis=-1)                # [TM, 2]
    partials_ref[0] = jnp.sum(contrib, axis=0, keepdims=True)               # (1, 2)


def pair_score_forward(x, labels, params, *, tile_rows=512):
    """x: [N, E] f32, labels: [N] int, params: dict of (pre-transposed) weights.

    Returns (loss: f32 scalar, logits: [N, 2] f32), matching Pair_Score.forward.
    """
    N, E = x.shape
    w1, b1 = params["w1"], params["b1"]
    w2, b2 = params["w2"], params["b2"]
    w3, b3 = params["w3"], params["b3"]
    class_w = params["class_w"].astype(jnp.float32)

    H = w1.shape[1]                      # 150
    C = w3.shape[1]                      # 2
    H_pad = _round_up(H, 128)            # 150 -> 256 (MXU-native width)
    C_pad = 128                          # lane-dense logits store

    TM = min(tile_rows, _round_up(N, 8))
    N_pad = _round_up(N, TM)
    G = N_pad // TM

    # Exact zero-padding of weights/biases and row padding of x / labels.
    w1p = jnp.pad(w1, ((0, 0), (0, H_pad - H)))
    b1p = jnp.pad(b1, (0, H_pad - H)).reshape(1, H_pad)
    w2p = jnp.pad(w2, ((0, H_pad - H), (0, H_pad - H)))
    b2p = jnp.pad(b2, (0, H_pad - H)).reshape(1, H_pad)
    w3p = jnp.pad(w3, ((0, H_pad - H), (0, C_pad - C)))
    b3p = jnp.pad(b3, (0, C_pad - C)).reshape(1, C_pad)
    xp = jnp.pad(x.astype(jnp.float32), ((0, N_pad - N), (0, 0)))
    labels_p = jnp.pad(labels.astype(jnp.int32), (0, N_pad - N)).reshape(N_pad, 1)

    kernel = functools.partial(pair_score_kernel, n_valid=N, tile_rows=TM)

    logits_pad, partials = pl.pallas_call(
        kernel,
        out_shape=(
            jax.ShapeDtypeStruct((N_pad, C_pad), jnp.float32),   # padded logits
            jax.ShapeDtypeStruct((G, 1, 2), jnp.float32),        # per-tile loss partials
        ),
        grid=(G,),
        in_specs=[
            pl.BlockSpec((TM, E), lambda i: (i, 0)),             # x tile (pipelined)
            pl.BlockSpec((E, H_pad), lambda i: (0, 0)),          # w1 (resident)
            pl.BlockSpec((1, H_pad), lambda i: (0, 0)),          # b1
            pl.BlockSpec((H_pad, H_pad), lambda i: (0, 0)),      # w2
            pl.BlockSpec((1, H_pad), lambda i: (0, 0)),          # b2
            pl.BlockSpec((H_pad, C_pad), lambda i: (0, 0)),      # w3
            pl.BlockSpec((1, C_pad), lambda i: (0, 0)),          # b3
            pl.BlockSpec((TM, 1), lambda i: (i, 0)),             # labels tile
            pl.BlockSpec(memory_space=pltpu.MemorySpace.SMEM),   # class weights (scalars)
        ],
        out_specs=(
            pl.BlockSpec((TM, C_pad), lambda i: (i, 0)),
            pl.BlockSpec((1, 1, 2), lambda i: (i, 0, 0)),
        ),
        compiler_params=pltpu.CompilerParams(
            dimension_semantics=("parallel",),                   # row tiles independent -> megacore on v7x
            vmem_limit_bytes=48 * 1024 * 1024,                   # explicit budget, safe on v5e/v6e/v7x
        ),
    )(xp, w1p, b1p, w2p, b2p, w3p, b3p, labels_p, class_w)

    logits = logits_pad[:N, :C]
    loss = jnp.sum(partials[:, 0, 0]) / jnp.sum(partials[:, 0, 1])
    return loss, logits


def init_params(key, embeds_dim, hidden_dim=150):
    """Deterministic synthetic init matching nn.Linear shapes (pre-transposed to [in, out])."""
    k1, k2, k3 = jax.random.split(key, 3)
    scale1 = 1.0 / jnp.sqrt(embeds_dim)
    scale2 = 1.0 / jnp.sqrt(hidden_dim)
    return {
        "w1": jax.random.normal(k1, (embeds_dim, hidden_dim), jnp.float32) * scale1,
        "b1": jnp.zeros((hidden_dim,), jnp.float32),
        "w2": jax.random.normal(k2, (hidden_dim, hidden_dim), jnp.float32) * scale2,
        "b2": jnp.zeros((hidden_dim,), jnp.float32),
        "w3": jax.random.normal(k3, (hidden_dim, 2), jnp.float32) * scale2,
        "b3": jnp.zeros((2,), jnp.float32),
        "class_w": jnp.array([1.0, 3.5], jnp.float32),
    }


def reference_forward(x, labels, params):
    """Pure-JAX reference for a sanity check."""
    h1 = jnp.maximum(x @ params["w1"] + params["b1"], 0.0)
    h2 = jnp.maximum(h1 @ params["w2"] + params["b2"], 0.0)
    logits = h2 @ params["w3"] + params["b3"]
    logp = jax.nn.log_softmax(logits, axis=-1)
    w = params["class_w"][labels]
    nll = -jnp.take_along_axis(logp, labels[:, None], axis=-1)[:, 0]
    loss = jnp.sum(w * nll) / jnp.sum(w)
    return loss, logits


if __name__ == "__main__":
    key = jax.random.PRNGKey(0)
    k_x, k_y, k_p = jax.random.split(key, 3)

    # Small, module-consistent shapes: n_utter=16, embeds_dim=256, hidden_dim=150.
    N, E, H = 16, 256, 150
    x = jax.random.normal(k_x, (N, E), jnp.float32)
    labels = jax.random.randint(k_y, (N,), 0, 2, jnp.int32)
    params = init_params(k_p, E, H)

    loss, logits = jax.jit(pair_score_forward)(x, labels, params)
    jax.block_until_ready((loss, logits))

    ref_loss, ref_logits = reference_forward(x, labels, params)
    # MXU f32 multi-pass vs XLA default matmul precision -> allow small slack.
    assert jnp.allclose(logits, ref_logits, atol=1e-3, rtol=1e-3), "logits mismatch"
    assert jnp.allclose(loss, ref_loss, atol=1e-3, rtol=1e-3), "loss mismatch"

    print("KERNEL_OK")
</pallas_src>

<mosaic_0001>
module attributes {stable_mosaic.version = 11 : i64} {
  func.func @pair_score_kernel(%arg0: i32, %arg1: memref<16x256xf32, #tpu.memory_space<vmem>>, %arg2: memref<256x256xf32, #tpu.memory_space<vmem>>, %arg3: memref<1x256xf32, #tpu.memory_space<vmem>>, %arg4: memref<256x256xf32, #tpu.memory_space<vmem>>, %arg5: memref<1x256xf32, #tpu.memory_space<vmem>>, %arg6: memref<256x128xf32, #tpu.memory_space<vmem>>, %arg7: memref<1x128xf32, #tpu.memory_space<vmem>>, %arg8: memref<16x1xi32, #tpu.memory_space<vmem>>, %arg9: memref<2xf32, #tpu.memory_space<smem>>, %arg10: memref<16x128xf32, #tpu.memory_space<vmem>>, %arg11: memref<1x1x2xf32, #tpu.memory_space<vmem>>) attributes {dimension_semantics = [#tpu.dimension_semantics<parallel>], iteration_bounds = array<i64: 1>, scalar_prefetch = 0 : i64, scratch_operands = 0 : i64, tpu.core_type = #tpu.core_type<tc>, window_params = [{transform_indices = @transform_0, window_bounds = array<i64: 16, 256>}, {pipeline_mode = #tpu.pipeline_mode<synchronous>, transform_indices = @transform_1, window_bounds = array<i64: 256, 256>}, {pipeline_mode = #tpu.pipeline_mode<synchronous>, transform_indices = @transform_2, window_bounds = array<i64: 1, 256>}, {pipeline_mode = #tpu.pipeline_mode<synchronous>, transform_indices = @transform_3, window_bounds = array<i64: 256, 256>}, {pipeline_mode = #tpu.pipeline_mode<synchronous>, transform_indices = @transform_4, window_bounds = array<i64: 1, 256>}, {pipeline_mode = #tpu.pipeline_mode<synchronous>, transform_indices = @transform_5, window_bounds = array<i64: 256, 128>}, {pipeline_mode = #tpu.pipeline_mode<synchronous>, transform_indices = @transform_6, window_bounds = array<i64: 1, 128>}, {transform_indices = @transform_7, window_bounds = array<i64: 16, 1>}, {transform_indices = @transform_8, window_bounds = array<i64: 2>}, {transform_indices = @transform_9, window_bounds = array<i64: 16, 128>}, {transform_indices = @transform_10, window_bounds = array<i64: 1, 1, 2>}]} {
    %c0 = arith.constant 0 : index
    %c0_0 = arith.constant 0 : index
    %0 = vector.load %arg1[%c0, %c0_0] : memref<16x256xf32, #tpu.memory_space<vmem>>, vector<16x256xf32>
    %c0_1 = arith.constant 0 : index
    %c0_2 = arith.constant 0 : index
    %1 = vector.load %arg2[%c0_1, %c0_2] : memref<256x256xf32, #tpu.memory_space<vmem>>, vector<256x256xf32>
    %cst = arith.constant dense<0.000000e+00> : vector<16x256xf32>
    %2 = tpu.matmul %0, %1, %cst {dimension_numbers = #tpu.dot_dimension_numbers<[1], [0], [0], [1], [0, 0, 1, 1], [], []>} : vector<16x256xf32>, vector<256x256xf32>, vector<16x256xf32> -> vector<16x256xf32>
    %c0_3 = arith.constant 0 : index
    %c0_4 = arith.constant 0 : index
    %3 = vector.load %arg3[%c0_3, %c0_4] : memref<1x256xf32, #tpu.memory_space<vmem>>, vector<1x256xf32>
    %4 = vector.broadcast %3 : vector<1x256xf32> to vector<16x256xf32>
    %5 = arith.addf %2, %4 : vector<16x256xf32>
    %cst_5 = arith.constant 0.000000e+00 : f32
    %6 = vector.broadcast %cst_5 : f32 to vector<16x256xf32>
    %7 = arith.maximumf %5, %6 : vector<16x256xf32>
    %c0_6 = arith.constant 0 : index
    %c0_7 = arith.constant 0 : index
    %8 = vector.load %arg4[%c0_6, %c0_7] : memref<256x256xf32, #tpu.memory_space<vmem>>, vector<256x256xf32>
    %cst_8 = arith.constant dense<0.000000e+00> : vector<16x256xf32>
    %9 = tpu.matmul %7, %8, %cst_8 {dimension_numbers = #tpu.dot_dimension_numbers<[1], [0], [0], [1], [0, 0, 1, 1], [], []>} : vector<16x256xf32>, vector<256x256xf32>, vector<16x256xf32> -> vector<16x256xf32>
    %c0_9 = arith.constant 0 : index
    %c0_10 = arith.constant 0 : index
    %10 = vector.load %arg5[%c0_9, %c0_10] : memref<1x256xf32, #tpu.memory_space<vmem>>, vector<1x256xf32>
    %11 = vector.broadcast %10 : vector<1x256xf32> to vector<16x256xf32>
    %12 = arith.addf %9, %11 : vector<16x256xf32>
    %cst_11 = arith.constant 0.000000e+00 : f32
    %13 = vector.broadcast %cst_11 : f32 to vector<16x256xf32>
    %14 = arith.maximumf %12, %13 : vector<16x256xf32>
    %c0_12 = arith.constant 0 : index
    %c0_13 = arith.constant 0 : index
    %15 = vector.load %arg6[%c0_12, %c0_13] : memref<256x128xf32, #tpu.memory_space<vmem>>, vector<256x128xf32>
    %cst_14 = arith.constant dense<0.000000e+00> : vector<16x128xf32>
    %16 = tpu.matmul %14, %15, %cst_14 {dimension_numbers = #tpu.dot_dimension_numbers<[1], [0], [0], [1], [0, 0, 1, 1], [], []>} : vector<16x256xf32>, vector<256x128xf32>, vector<16x128xf32> -> vector<16x128xf32>
    %c0_15 = arith.constant 0 : index
    %c0_16 = arith.constant 0 : index
    %17 = vector.load %arg7[%c0_15, %c0_16] : memref<1x128xf32, #tpu.memory_space<vmem>>, vector<1x128xf32>
    %18 = vector.broadcast %17 : vector<1x128xf32> to vector<16x128xf32>
    %19 = arith.addf %16, %18 : vector<16x128xf32>
    %c0_17 = arith.constant 0 : index
    %c0_18 = arith.constant 0 : index
    %20 = vector.load %arg10[%c0_17, %c0_18] : memref<16x128xf32, #tpu.memory_space<vmem>>, vector<16x128xf32>
    tpu.vector_store %arg10[%c0_17, %c0_18], %19 {strides = array<i32>} : memref<16x128xf32, #tpu.memory_space<vmem>>, vector<16x128xf32>,
    %21 = vector.extract_strided_slice %19 {offsets = [0, 1], sizes = [16, 1], strides = [1, 1]} : vector<16x128xf32> to vector<16x1xf32>
    %22 = vector.extract_strided_slice %19 {offsets = [0, 0], sizes = [16, 1], strides = [1, 1]} : vector<16x128xf32> to vector<16x1xf32>
    %23 = arith.subf %21, %22 : vector<16x1xf32>
    %c0_19 = arith.constant 0 : index
    %c0_20 = arith.constant 0 : index
    %24 = vector.load %arg8[%c0_19, %c0_20] : memref<16x1xi32, #tpu.memory_space<vmem>>, vector<16x1xi32>
    %c2_i32 = arith.constant 2 : i32
    %25 = vector.broadcast %c2_i32 : i32 to vector<16x1xi32>
    %26 = arith.muli %25, %24 : vector<16x1xi32>
    %c1_i32 = arith.constant 1 : i32
    %27 = vector.broadcast %c1_i32 : i32 to vector<16x1xi32>
    %28 = arith.subi %26, %27 : vector<16x1xi32>
    %29 = arith.sitofp %28 : vector<16x1xi32> to vector<16x1xf32>
    %cst_21 = arith.constant 0.000000e+00 : f32
    %30 = vector.broadcast %cst_21 : f32 to vector<16x1xf32>
    %31 = arith.subf %30, %29 : vector<16x1xf32>
    %32 = arith.mulf %31, %23 : vector<16x1xf32>
    %cst_22 = arith.constant 0.000000e+00 : f32
    %33 = vector.broadcast %cst_22 : f32 to vector<16x1xf32>
    %34 = arith.maximumf %32, %33 : vector<16x1xf32>
    %35 = math.absf %32 : vector<16x1xf32>
    %cst_23 = arith.constant 0.000000e+00 : f32
    %36 = vector.broadcast %cst_23 : f32 to vector<16x1xf32>
    %37 = arith.subf %36, %35 : vector<16x1xf32>
    %38 = math.exp %37 : vector<16x1xf32>
    %cst_24 = arith.constant 1.000000e+00 : f32
    %39 = vector.broadcast %cst_24 : f32 to vector<16x1xf32>
    %40 = arith.addf %39, %38 : vector<16x1xf32>
    %41 = math.log %40 : vector<16x1xf32>
    %42 = arith.addf %34, %41 : vector<16x1xf32>
    %c1_i32_25 = arith.constant 1 : i32
    %43 = vector.broadcast %c1_i32_25 : i32 to vector<16x1xi32>
    %44 = arith.cmpi eq, %24, %43 : vector<16x1xi32>
    %c1 = arith.constant 1 : index
    %45 = memref.load %arg9[%c1] : memref<2xf32, #tpu.memory_space<smem>>
    %c0_26 = arith.constant 0 : index
    %46 = memref.load %arg9[%c0_26] : memref<2xf32, #tpu.memory_space<smem>>
    %47 = vector.broadcast %45 : f32 to vector<16x1xf32>
    %48 = vector.broadcast %46 : f32 to vector<16x1xf32>
    %49 = arith.select %44, %47, %48 : vector<16x1xi1>, vector<16x1xf32>
    %c16_i32 = arith.constant 16 : i32
    %50 = arith.muli %arg0, %c16_i32 : i32
    %51 = tpu.iota {dimensions = array<i32: 0>} : vector<16x1xi32>
    %52 = vector.broadcast %50 : i32 to vector<16x1xi32>
    %53 = arith.addi %52, %51 : vector<16x1xi32>
    %c16_i32_27 = arith.constant 16 : i32
    %54 = vector.broadcast %c16_i32_27 : i32 to vector<16x1xi32>
    %55 = arith.cmpi slt, %53, %54 : vector<16x1xi32>
    %cst_28 = arith.constant 0.000000e+00 : f32
    %56 = vector.broadcast %cst_28 : f32 to vector<16x1xf32>
    %57 = arith.select %55, %49, %56 : vector<16x1xi1>, vector<16x1xf32>
    %58 = arith.mulf %57, %42 : vector<16x1xf32>
    %59 = tpu.concatenate %58, %57 in 1 : vector<16x1xf32>, vector<16x1xf32> -> vector<16x2xf32>
    %cst_29 = arith.constant dense<0.000000e+00> : vector<2xf32>
    %60 = vector.multi_reduction <add>, %59, %cst_29 [0] : vector<16x2xf32> to vector<2xf32>
    %61 = vector.shape_cast %60 : vector<2xf32> to vector<1x2xf32>
    %c0_30 = arith.constant 0 : index
    %c0_31 = arith.constant 0 : index
    %c0_32 = arith.constant 0 : index
    %62 = vector.load %arg11[%c0_30, %c0_31, %c0_32] : memref<1x1x2xf32, #tpu.memory_space<vmem>>, vector<1x1x2xf32>
    %63 = vector.shape_cast %62 : vector<1x1x2xf32> to vector<1x2xf32>
    %64 = vector.shape_cast %61 : vector<1x2xf32> to vector<1x1x2xf32>
    tpu.vector_store %arg11[%c0_30, %c0_31, %c0_32], %64 {strides = array<i32>} : memref<1x1x2xf32, #tpu.memory_space<vmem>>, vector<1x1x2xf32>,
    return
  }
  func.func @transform_0(%arg0: i32) -> (i32, i32) {
    %c0_i32 = arith.constant 0 : i32
    %c0_i32_0 = arith.constant 0 : i32
    return %arg0, %c0_i32 : i32, i32
  }
  func.func @transform_1(%arg0: i32) -> (i32, i32) {
    %c0_i32 = arith.constant 0 : i32
    %c0_i32_0 = arith.constant 0 : i32
    %c0_i32_1 = arith.constant 0 : i32
    return %c0_i32, %c0_i32_0 : i32, i32
  }
  func.func @transform_2(%arg0: i32) -> (i32, i32) {
    %c0_i32 = arith.constant 0 : i32
    %c0_i32_0 = arith.constant 0 : i32
    %c0_i32_1 = arith.constant 0 : i32
    return %c0_i32, %c0_i32_0 : i32, i32
  }
  func.func @transform_3(%arg0: i32) -> (i32, i32) {
    %c0_i32 = arith.constant 0 : i32
    %c0_i32_0 = arith.constant 0 : i32
    %c0_i32_1 = arith.constant 0 : i32
    return %c0_i32, %c0_i32_0 : i32, i32
  }
  func.func @transform_4(%arg0: i32) -> (i32, i32) {
    %c0_i32 = arith.constant 0 : i32
    %c0_i32_0 = arith.constant 0 : i32
    %c0_i32_1 = arith.constant 0 : i32
    return %c0_i32, %c0_i32_0 : i32, i32
  }
  func.func @transform_5(%arg0: i32) -> (i32, i32) {
    %c0_i32 = arith.constant 0 : i32
    %c0_i32_0 = arith.constant 0 : i32
    %c0_i32_1 = arith.constant 0 : i32
    return %c0_i32, %c0_i32_0 : i32, i32
  }
  func.func @transform_6(%arg0: i32) -> (i32, i32) {
    %c0_i32 = arith.constant 0 : i32
    %c0_i32_0 = arith.constant 0 : i32
    %c0_i32_1 = arith.constant 0 : i32
    return %c0_i32, %c0_i32_0 : i32, i32
  }
  func.func @transform_7(%arg0: i32) -> (i32, i32) {
    %c0_i32 = arith.constant 0 : i32
    %c0_i32_0 = arith.constant 0 : i32
    return %arg0, %c0_i32 : i32, i32
  }
  func.func @transform_8(%arg0: i32) -> i32 {
    %c0_i32 = arith.constant 0 : i32
    %c0_i32_0 = arith.constant 0 : i32
    return %c0_i32 : i32
  }
  func.func @transform_9(%arg0: i32) -> (i32, i32) {
    %c0_i32 = arith.constant 0 : i32
    %c0_i32_0 = arith.constant 0 : i32
    return %arg0, %c0_i32 : i32, i32
  }
  func.func @transform_10(%arg0: i32) -> (i32, i32, i32) {
    %c0_i32 = arith.constant 0 : i32
    %c0_i32_0 = arith.constant 0 : i32
    %c0_i32_1 = arith.constant 0 : i32
    return %arg0, %c0_i32, %c0_i32_0 : i32, i32, i32
  }
}

</mosaic_0001>

<bundles_post_ra>
// kernel: pair_score_forward.1
= control target key start
LH: loop header
LB: loop body
LE: loop exit
PB: predicated region body
PF: predicated region fallthrough
CT: control target
= control target key end

     0   :  { %16 = vsyncpa [#allocation3], 0  ;;  %s1410_s0 = inlined_call_operand.vmem [shape: f32[16,256], index: 0, kind: input, shape index: {}]   ;;  %s1411_s1 = inlined_call_operand.vmem [shape: f32[256,256], index: 1, kind: input, shape index: {}]   ;;  %s1412_s2 = inlined_call_operand.vmem [shape: f32[1,256], index: 2, kind: input, shape index: {}]   ;;  %s1413_s3 = inlined_call_operand.vmem [shape: f32[256,256], index: 3, kind: input, shape index: {}]   ;;  %s1414_s4 = inlined_call_operand.vmem [shape: f32[1,256], index: 4, kind: input, shape index: {}]   ;;  %s1415_s5 = inlined_call_operand.vmem [shape: f32[256,128], index: 5, kind: input, shape index: {}]   ;;  %s1416_s6 = inlined_call_operand.vmem [shape: f32[1,128], index: 6, kind: input, shape index: {}]   ;;  %s1417_s7 = inlined_call_operand.vmem [shape: s32[16,1], index: 7, kind: input, shape index: {}]   ;;  %s1418_s8 = inlined_call_operand.vmem [shape: f32[2], index: 8, kind: input, shape index: {}]   ;;  %s1419_s9 = inlined_call_operand.vmem [shape: f32[16,128], index: 9, kind: output, shape index: {0}]   ;;  %s1420_s10 = inlined_call_operand.vmem [shape: f32[1,1,2], index: 10, kind: output, shape index: {1}]  }
   0x1   :  { %s39_s15 = sshll.u32 %s1418_s8, 4  ;;  %s40_s15 = int_to_ptr.vmem [resolvable:$true] %s39_s15 }
   0x2   :  { %s811_s16 = scalar_lea.vmem %s40_s15, 16  ;;  %p816_p1 = scmp.lt.s32.totalorder %s40_s15, %s40_s15 }
   0x3   :  { %p812_p0 = scmp.ne.s32.totalorder %s40_s15, %s811_s16  ;;  %p817_p2 = scmp.lt.s32.totalorder %s811_s16, %s811_s16 }
   0x5   :  { %p818_p3 = por %p817_p2, %p816_p1 }
   0x7   :  { %p819_p4 = pnand %p818_p3, %p812_p0 }
   0x9   :  { %822 = shalt.err (!%p819_p4)
}
   0xa   :  { %s825_s17 = smov [#allocation2]  }
   0xb   :  { %42 = dma.vmem_to_smem %s40_s15, 16, %s825_s17, [#allocation3]  }
   0xc   :  { %823 = dma.done.wait [#allocation3], 16  }
   0xd   :  { %824 = vsyncadd [#allocation3], 4294967280 }
   0xe   :  { %46 = sfence }
   0xf   :  { %v52_v0 = vld [vmem:[%s1411_s1 + $0x8] sm:$0xff]  ;;  %v54_v1 = vld [vmem:[%s1411_s1 + $0x18] sm:$0xff]  ;;  %v51_v2 = vld [vmem:[%s1411_s1] sm:$0xff]  ;;  %vm558_vm2 = vcmask 7168   ;;  %vm561_vm3 = vcmask 15360   ;;  %vm571_vm4 = vcmask 8192  }
  0x10   :  { %v624_v3 = vpack.c.bf16 %v54_v1, %v52_v0  ;;  %v53_v4 = vld [vmem:[%s1411_s1 + $0x10] sm:$0xff]  ;;  %v56_v5 = vld [vmem:[%s1411_s1 + $0x28] sm:$0xff]  ;;  %v58_v6 = vld [vmem:[%s1411_s1 + $0x38] sm:$0xff] }
  0x11   :  { %v626_v7 = vpack.c.bf16 %v53_v4, %v51_v2  ;;  %v628_v8 = vpack.c.bf16 %v58_v6, %v56_v5  ;;  %v55_v9 = vld [vmem:[%s1411_s1 + $0x20] sm:$0xff]  ;;  %v57_v10 = vld [vmem:[%s1411_s1 + $0x30] sm:$0xff]  ;;  %v60_v11 = vld [vmem:[%s1411_s1 + $0x48] sm:$0xff] }
  0x12   :  { %625 = vmatprep.subr.bf16.mxu0 %v624_v3  ;;  %v62_v12 = vld [vmem:[%s1411_s1 + $0x58] sm:$0xff]  ;;  %v630_v13 = vpack.c.bf16 %v57_v10, %v55_v9  ;;  %v59_v15 = vld [vmem:[%s1411_s1 + $0x40] sm:$0xff]  ;;  %v61_v16 = vld [vmem:[%s1411_s1 + $0x50] sm:$0xff] }
  0x13   :  { %627 = vmatpush1.bf16.msra.mxu0 %v626_v7  ;;  %v632_v14 = vpack.c.bf16 %v62_v12, %v60_v11  ;;  %v64_v17 = vld [vmem:[%s1411_s1 + $0x68] sm:$0xff]  ;;  %v66_v18 = vld [vmem:[%s1411_s1 + $0x78] sm:$0xff]  ;;  %v634_v19 = vpack.c.bf16 %v61_v16, %v59_v15  ;;  %v63_v21 = vld [vmem:[%s1411_s1 + $0x60] sm:$0xff] }
  0x14   :  { %629 = vmatprep.subr.bf16.mxu0 %v628_v8  ;;  %v636_v20 = vpack.c.bf16 %v66_v18, %v64_v17  ;;  %v65_v22 = vld [vmem:[%s1411_s1 + $0x70] sm:$0xff]  ;;  %v68_v23 = vld [vmem:[%s1411_s1 + $0x88] sm:$0xff]  ;;  %v70_v24 = vld [vmem:[%s1411_s1 + $0x98] sm:$0xff] }
  0x15   :  { %v638_v25 = vpack.c.bf16 %v65_v22, %v63_v21  ;;  %v640_v26 = vpack.c.bf16 %v70_v24, %v68_v23  ;;  %v67_v27 = vld [vmem:[%s1411_s1 + $0x80] sm:$0xff]  ;;  %v69_v28 = vld [vmem:[%s1411_s1 + $0x90] sm:$0xff]  ;;  %v72_v29 = vld [vmem:[%s1411_s1 + $0xa8] sm:$0xff] }
  0x16   :  { %v74_v30 = vld [vmem:[%s1411_s1 + $0xb8] sm:$0xff]  ;;  %v642_v31 = vpack.c.bf16 %v69_v28, %v67_v27  ;;  %v71_v33 = vld [vmem:[%s1411_s1 + $0xa0] sm:$0xff]  ;;  %v73_v34 = vld [vmem:[%s1411_s1 + $0xb0] sm:$0xff] }
  0x17   :  { %631 = vmatpush1.bf16.msra.mxu0 %v630_v13  ;;  %v644_v32 = vpack.c.bf16 %v74_v30, %v72_v29  ;;  %v76_v35 = vld [vmem:[%s1411_s1 + $0xc8] sm:$0xff]  ;;  %v78_v36 = vld [vmem:[%s1411_s1 + $0xd8] sm:$0xff]  ;;  %v646_v37 = vpack.c.bf16 %v73_v34, %v71_v33  ;;  %v75_v39 = vld [vmem:[%s1411_s1 + $0xc0] sm:$0xff] }
  0x18   :  { %633 = vmatprep.subr.bf16.mxu0 %v632_v14  ;;  %v648_v38 = vpack.c.bf16 %v78_v36, %v76_v35  ;;  %v77_v40 = vld [vmem:[%s1411_s1 + $0xd0] sm:$0xff]  ;;  %v48_v41 = vld [vmem:[%s1410_s0 + $0x8] sm:$0xff]  ;;  %v82_v43 = vld [vmem:[%s1411_s1 + $0xf8] sm:$0xff] }
  0x19   :  { %v80_v42 = vld [vmem:[%s1411_s1 + $0xe8] sm:$0xff]  ;;  %191 = vmatprep.mubr.f32.mxu0 %v48_v41  ;;  %v79_v45 = vld [vmem:[%s1411_s1 + $0xe0] sm:$0xff]  ;;  %v81_v46 = vld [vmem:[%s1411_s1 + $0xf0] sm:$0xff]  ;;  %v650_v50 = vpack.c.bf16 %v77_v40, %v75_v39 }
  0x1a   :  { %v209_v44 = vld [vmem:[%s1413_s3 + $0x8] sm:$0xff]  ;;  %v211_v47 = vld [vmem:[%s1413_s3 + $0x18] sm:$0xff]  ;;  %v208_v48 = vld [vmem:[%s1413_s3] sm:$0xff]  ;;  %v652_v56 = vpack.c.bf16 %v82_v43, %v80_v42  ;;  %v654_v0 = vpack.c.bf16 %v81_v46, %v79_v45 }
  0x1b   :  { %635 = vmatpush1.bf16.msra.mxu0 %v634_v19  ;;  %v210_v49 = vld [vmem:[%s1413_s3 + $0x10] sm:$0xff]  ;;  %v688_v51 = vpack.c.bf16 %v211_v47, %v209_v44  ;;  %v213_v53 = vld [vmem:[%s1413_s3 + $0x28] sm:$0xff]  ;;  %v215_v54 = vld [vmem:[%s1413_s3 + $0x38] sm:$0xff] }
  0x1c   :  { %637 = vmatprep.subr.bf16.mxu0 %v636_v20  ;;  %v690_v52 = vpack.c.bf16 %v210_v49, %v208_v48  ;;  %v212_v55 = vld [vmem:[%s1413_s3 + $0x20] sm:$0xff]  ;;  %v692_v57 = vpack.c.bf16 %v215_v54, %v213_v53  ;;  %v214_v58 = vld [vmem:[%s1413_s3 + $0x30] sm:$0xff]  ;;  %v217_v59 = vld [vmem:[%s1413_s3 + $0x48] sm:$0xff] }
  0x1d   :  { %v219_v60 = vld [vmem:[%s1413_s3 + $0x58] sm:$0xff]  ;;  %v84_v61 = vld [vmem:[%s1411_s1 + $0x108] sm:$0xff]  ;;  %689 = vmatprep.subr.bf16.mxu1 %v688_v51  ;;  %v694_v63 = vpack.c.bf16 %v214_v58, %v212_v55  ;;  %v83_v1 = vld [vmem:[%s1411_s1 + $0x100] sm:$0xff] }
  0x1e   :  { %v86_v62 = vld [vmem:[%s1411_s1 + $0x118] sm:$0xff]  ;;  %691 = vmatpush1.bf16.msra.mxu1 %v690_v52  ;;  %v696_v2 = vpack.c.bf16 %v219_v60, %v217_v59  ;;  %v216_v3 = vld [vmem:[%s1413_s3 + $0x40] sm:$0xff]  ;;  %v218_v4 = vld [vmem:[%s1413_s3 + $0x50] sm:$0xff] }
  0x1f   :  { %639 = vmatpush1.bf16.msra.mxu0 %v638_v25  ;;  %693 = vmatprep.subr.bf16.mxu1 %v692_v57  ;;  %v656_v5 = vpack.c.bf16 %v86_v62, %v84_v61  ;;  %v85_v6 = vld [vmem:[%s1411_s1 + $0x110] sm:$0xff]  ;;  %v221_v7 = vld [vmem:[%s1413_s3 + $0x68] sm:$0xff]  ;;  %v223_v8 = vld [vmem:[%s1413_s3 + $0x78] sm:$0xff]  ;;  %v698_v11 = vpack.c.bf16 %v218_v4, %v216_v3 }
  0x20   :  { %641 = vmatprep.subr.bf16.mxu0 %v640_v26  ;;  %v88_v9 = vld [vmem:[%s1411_s1 + $0x128] sm:$0xff]  ;;  %v90_v10 = vld [vmem:[%s1411_s1 + $0x138] sm:$0xff]  ;;  %v658_v12 = vpack.c.bf16 %v85_v6, %v83_v1  ;;  %v87_v13 = vld [vmem:[%s1411_s1 + $0x120] sm:$0xff]  ;;  %v700_v14 = vpack.c.bf16 %v223_v8, %v221_v7 }
  0x21   :  { %v220_v15 = vld [vmem:[%s1413_s3 + $0x60] sm:$0xff]  ;;  %v222_v16 = vld [vmem:[%s1413_s3 + $0x70] sm:$0xff]  ;;  %v660_v17 = vpack.c.bf16 %v90_v10, %v88_v9  ;;  %v225_v19 = vld [vmem:[%s1413_s3 + $0x88] sm:$0xff] }
  0x22   :  { %695 = vmatpush1.bf16.msra.mxu1 %v694_v63  ;;  %v89_v18 = vld [vmem:[%s1411_s1 + $0x130] sm:$0xff]  ;;  %v227_v20 = vld [vmem:[%s1413_s3 + $0x98] sm:$0xff]  ;;  %v92_v21 = vld [vmem:[%s1411_s1 + $0x148] sm:$0xff]  ;;  %v702_v23 = vpack.c.bf16 %v222_v16, %v220_v15 }
  0x23   :  { %643 = vmatpush1.bf16.msra.mxu0 %v642_v31  ;;  %697 = vmatprep.subr.bf16.mxu1 %v696_v2  ;;  %v94_v22 = vld [vmem:[%s1411_s1 + $0x158] sm:$0xff]  ;;  %v662_v24 = vpack.c.bf16 %v89_v18, %v87_v13  ;;  %v91_v25 = vld [vmem:[%s1411_s1 + $0x140] sm:$0xff]  ;;  %v704_v26 = vpack.c.bf16 %v227_v20, %v225_v19  ;;  %v226_v28 = vld [vmem:[%s1413_s3 + $0x90] sm:$0xff] }
  0x24   :  { %645 = vmatprep.subr.bf16.mxu0 %v644_v32  ;;  %v224_v27 = vld [vmem:[%s1413_s3 + $0x80] sm:$0xff]  ;;  %v664_v29 = vpack.c.bf16 %v94_v22, %v92_v21  ;;  %v93_v30 = vld [vmem:[%s1411_s1 + $0x150] sm:$0xff]  ;;  %v229_v31 = vld [vmem:[%s1413_s3 + $0xa8] sm:$0xff] }
  0x25   :  { %v231_v32 = vld [vmem:[%s1413_s3 + $0xb8] sm:$0xff]  ;;  %v96_v33 = vld [vmem:[%s1411_s1 + $0x168] sm:$0xff]  ;;  %v706_v35 = vpack.c.bf16 %v226_v28, %v224_v27  ;;  %v666_v36 = vpack.c.bf16 %v93_v30, %v91_v25  ;;  %v228_v39 = vld [vmem:[%s1413_s3 + $0xa0] sm:$0xff] }
  0x26   :  { %699 = vmatpush1.bf16.msra.mxu1 %v698_v11  ;;  %v98_v34 = vld [vmem:[%s1411_s1 + $0x178] sm:$0xff]  ;;  %v230_v40 = vld [vmem:[%s1413_s3 + $0xb0] sm:$0xff]  ;;  %v233_v43 = vld [vmem:[%s1413_s3 + $0xc8] sm:$0xff] }
  0x27   :  { %647 = vmatpush1.bf16.msra.mxu0 %v646_v37  ;;  %701 = vmatprep.subr.bf16.mxu1 %v700_v14  ;;  %v95_v37 = vld [vmem:[%s1411_s1 + $0x160] sm:$0xff]  ;;  %v668_v41 = vpack.c.bf16 %v98_v34, %v96_v33  ;;  %v97_v42 = vld [vmem:[%s1411_s1 + $0x170] sm:$0xff]  ;;  %v235_v44 = vld [vmem:[%s1413_s3 + $0xd8] sm:$0xff]  ;;  %v710_v47 = vpack.c.bf16 %v230_v40, %v228_v39 }
  0x28   :  { %649 = vmatprep.subr.bf16.mxu0 %v648_v38  ;;  %v708_v38 = vpack.c.bf16 %v231_v32, %v229_v31  ;;  %v100_v45 = vld [vmem:[%s1411_s1 + $0x188] sm:$0xff]  ;;  %v102_v46 = vld [vmem:[%s1411_s1 + $0x198] sm:$0xff]  ;;  %v670_v48 = vpack.c.bf16 %v97_v42, %v95_v37  ;;  %v99_v49 = vld [vmem:[%s1411_s1 + $0x180] sm:$0xff] }
  0x29   :  { %v232_v51 = vld [vmem:[%s1413_s3 + $0xc0] sm:$0xff]  ;;  %v234_v52 = vld [vmem:[%s1413_s3 + $0xd0] sm:$0xff]  ;;  %v672_v53 = vpack.c.bf16 %v102_v46, %v100_v45  ;;  %v237_v55 = vld [vmem:[%s1413_s3 + $0xe8] sm:$0xff] }
  0x2a   :  { %703 = vmatpush1.bf16.msra.mxu1 %v702_v23  ;;  %v101_v54 = vld [vmem:[%s1411_s1 + $0x190] sm:$0xff]  ;;  %v104_v57 = vld [vmem:[%s1411_s1 + $0x1a8] sm:$0xff]  ;;  %v106_v58 = vld [vmem:[%s1411_s1 + $0x1b8] sm:$0xff]  ;;  %v714_v59 = vpack.c.bf16 %v234_v52, %v232_v51 }
  0x2b   :  { %651 = vmatpush1.bf16.msra.mxu0 %v650_v50  ;;  %705 = vmatprep.subr.bf16.mxu1 %v704_v26  ;;  %v712_v50 = vpack.c.bf16 %v235_v44, %v233_v43  ;;  %v674_v60 = vpack.c.bf16 %v101_v54, %v99_v49  ;;  %v103_v61 = vld [vmem:[%s1411_s1 + $0x1a0] sm:$0xff]  ;;  %v676_v1 = vpack.c.bf16 %v106_v58, %v104_v57  ;;  %v105_v2 = vld [vmem:[%s1411_s1 + $0x1b0] sm:$0xff]  ;;  %v241_v3 = vld [vmem:[%s1413_s3 + $0x108] sm:$0xff] }
  0x2c   :  { %653 = vmatprep.subr.bf16.mxu0 %v652_v56  ;;  %v239_v56 = vld [vmem:[%s1413_s3 + $0xf8] sm:$0xff]  ;;  %v236_v63 = vld [vmem:[%s1413_s3 + $0xe0] sm:$0xff]  ;;  %v678_v8 = vpack.c.bf16 %v105_v2, %v103_v61  ;;  %v109_v14 = vld [vmem:[%s1411_s1 + $0x1d0] sm:$0xff] }
  0x2d   :  { %v716_v62 = vpack.c.bf16 %v239_v56, %v237_v55  ;;  %v243_v4 = vld [vmem:[%s1413_s3 + $0x118] sm:$0xff]  ;;  %v107_v9 = vld [vmem:[%s1411_s1 + $0x1c0] sm:$0xff]  ;;  %v245_v15 = vld [vmem:[%s1413_s3 + $0x128] sm:$0xff] }
  0x2e   :  { %707 = vmatpush1.bf16.msra.mxu1 %v706_v35  ;;  %v110_v6 = vld [vmem:[%s1411_s1 + $0x1d8] sm:$0xff]  ;;  %v720_v10 = vpack.c.bf16 %v243_v4, %v241_v3  ;;  %v240_v11 = vld [vmem:[%s1413_s3 + $0x100] sm:$0xff]  ;;  %v682_v20 = vpack.c.bf16 %v109_v14, %v107_v9  ;;  %v113_v26 = vld [vmem:[%s1411_s1 + $0x1f0] sm:$0xff] }
  0x2f   :  { %655 = vmatpush1.bf16.msra.mxu0 %v654_v0  ;;  %709 = vmatprep.subr.bf16.mxu1 %v708_v38  ;;  %v238_v0 = vld [vmem:[%s1413_s3 + $0xf0] sm:$0xff]  ;;  %v247_v16 = vld [vmem:[%s1413_s3 + $0x138] sm:$0xff]  ;;  %v111_v21 = vld [vmem:[%s1411_s1 + $0x1e0] sm:$0xff] }
  0x30   :  { %657 = vmatprep.subr.bf16.mxu0 %v656_v5  ;;  %v108_v5 = vld [vmem:[%s1411_s1 + $0x1c8] sm:$0xff]  ;;  %v718_v7 = vpack.c.bf16 %v238_v0, %v236_v63  ;;  %v114_v18 = vld [vmem:[%s1411_s1 + $0x1f8] sm:$0xff]  ;;  %v724_v22 = vpack.c.bf16 %v247_v16, %v245_v15  ;;  %v244_v23 = vld [vmem:[%s1413_s3 + $0x120] sm:$0xff]  ;;  %v686_v30 = vpack.c.bf16 %v113_v26, %v111_v21 }
  0x31   :  { %v680_v13 = vpack.c.bf16 %v110_v6, %v108_v5  ;;  %v249_v27 = vld [vmem:[%s1413_s3 + $0x148] sm:$0xff]  ;;  %v251_v28 = vld [vmem:[%s1413_s3 + $0x158] sm:$0xff]  ;;  %v248_v32 = vld [vmem:[%s1413_s3 + $0x140] sm:$0xff] }
  0x32   :  { %711 = vmatpush1.bf16.msra.mxu1 %v710_v47  ;;  %v728_v31 = vpack.c.bf16 %v251_v28, %v249_v27  ;;  %v250_v33 = vld [vmem:[%s1413_s3 + $0x150] sm:$0xff]  ;;  %v253_v34 = vld [vmem:[%s1413_s3 + $0x168] sm:$0xff]  ;;  %v255_v35 = vld [vmem:[%s1413_s3 + $0x178] sm:$0xff] }
  0x33   :  { %659 = vmatpush1.bf16.msra.mxu0 %v658_v12  ;;  %713 = vmatprep.subr.bf16.mxu1 %v712_v50  ;;  %v242_v12 = vld [vmem:[%s1413_s3 + $0x110] sm:$0xff]  ;;  %v47_v37 = vld [vmem:[%s1410_s0] sm:$0xff]  ;;  %v732_v38 = vpack.c.bf16 %v255_v35, %v253_v34  ;;  %v257_v42 = vld [vmem:[%s1413_s3 + $0x188] sm:$0xff] }
  0x34   :  { %661 = vmatprep.subr.bf16.mxu0 %v660_v17  ;;  %v112_v17 = vld [vmem:[%s1411_s1 + $0x1e8] sm:$0xff]  ;;  %v722_v19 = vpack.c.bf16 %v242_v12, %v240_v11  ;;  %v252_v39 = vld [vmem:[%s1413_s3 + $0x160] sm:$0xff]  ;;  %v254_v40 = vld [vmem:[%s1413_s3 + $0x170] sm:$0xff] }
  0x35   :  { %v684_v25 = vpack.c.bf16 %v114_v18, %v112_v17  ;;  %v259_v43 = vld [vmem:[%s1413_s3 + $0x198] sm:$0xff]  ;;  %v734_v44 = vpack.c.bf16 %v254_v40, %v252_v39  ;;  %v49_v45 = vld [vmem:[%s1410_s0 + $0x10] sm:$0xff]  ;;  %v256_v47 = vld [vmem:[%s1413_s3 + $0x180] sm:$0xff] }
  0x36   :  { %715 = vmatpush1.bf16.msra.mxu1 %v714_v59  ;;  %v736_v46 = vpack.c.bf16 %v259_v43, %v257_v42  ;;  %v261_v49 = vld [vmem:[%s1413_s3 + $0x1a8] sm:$0xff]  ;;  %v263_v50 = vld [vmem:[%s1413_s3 + $0x1b8] sm:$0xff]  ;;  %v262_v54 = vld [vmem:[%s1413_s3 + $0x1b0] sm:$0xff]  ;;  %v117_v43 = vlaneseq }
  0x37   :  { %663 = vmatpush1.bf16.msra.mxu0 %v662_v24  ;;  %717 = vmatprep.subr.bf16.mxu1 %v716_v62  ;;  %v246_v24 = vld [vmem:[%s1413_s3 + $0x130] sm:$0xff]  ;;  %v740_v52 = vpack.c.bf16 %v263_v50, %v261_v49  ;;  %v265_v55 = vld [vmem:[%s1413_s3 + $0x1c8] sm:$0xff]  ;;  %v267_v56 = vld [vmem:[%s1413_s3 + $0x1d8] sm:$0xff] }
  0x38   :  { %665 = vmatprep.subr.bf16.mxu0 %v664_v29  ;;  %v726_v29 = vpack.c.bf16 %v246_v24, %v244_v23  ;;  %v744_v58 = vpack.c.bf16 %v267_v56, %v265_v55  ;;  %v264_v59 = vld [vmem:[%s1413_s3 + $0x1c0] sm:$0xff]  ;;  %v269_v62 = vld [vmem:[%s1413_s3 + $0x1e8] sm:$0xff]  ;;  %v271_v63 = vld [vmem:[%s1413_s3 + $0x1f8] sm:$0xff] }
  0x39   :  { %v748_v0 = vpack.c.bf16 %v271_v63, %v269_v62  ;;  %v270_v2 = vld [vmem:[%s1413_s3 + $0x1f0] sm:$0xff]  ;;  %v381_v4 = vld [vmem:[%s1415_s5 + $0x80] sm:$0xff]  ;;  %v382_v5 = vld [vmem:[%s1415_s5 + $0x88] sm:$0xff] }
  0x3a   :  { %719 = vmatpush1.bf16.msra.mxu1 %v718_v7  ;;  %v365_v6 = vld [vmem:[%s1415_s5] sm:$0xff]  ;;  %v752_v7 = vpack.c.bf16 %v382_v5, %v381_v4  ;;  %v383_v9 = vld [vmem:[%s1415_s5 + $0x90] sm:$0xff]  ;;  %v368_v14 = vld [vmem:[%s1415_s5 + $0x18] sm:$0xff] }
  0x3b   :  { %667 = vmatpush1.bf16.msra.mxu0 %v666_v36  ;;  %721 = vmatprep.subr.bf16.mxu1 %v720_v10  ;;  %v730_v36 = vpack.c.bf16 %v250_v33, %v248_v32  ;;  %v384_v10 = vld [vmem:[%s1415_s5 + $0x98] sm:$0xff]  ;;  %v385_v15 = vld [vmem:[%s1415_s5 + $0xa0] sm:$0xff]  ;;  %v386_v16 = vld [vmem:[%s1415_s5 + $0xa8] sm:$0xff] }
  0x3c   :  { %669 = vmatprep.subr.bf16.mxu0 %v668_v41  ;;  %v50_v41 = vld [vmem:[%s1410_s0 + $0x18] sm:$0xff]  ;;  %v1302_v12 = vpack.c.bf16 %v384_v10, %v383_v9  ;;  %v760_v18 = vpack.c.bf16 %v386_v16, %v385_v15  ;;  %v387_v21 = vld [vmem:[%s1415_s5 + $0xb0] sm:$0xff]  ;;  %v389_v27 = vld [vmem:[%s1415_s5 + $0xc0] sm:$0xff]  ;;  %s826_s0 = smov 1  }
  0x3d   :  { %v372_v26 = vld [vmem:[%s1415_s5 + $0x38] sm:$0xff]  ;;  %v390_v28 = vld [vmem:[%s1415_s5 + $0xc8] sm:$0xff]  ;;  %v391_v33 = vld [vmem:[%s1415_s5 + $0xd0] sm:$0xff] }
  0x3e   :  { %723 = vmatpush1.bf16.msra.mxu1 %v722_v19  ;;  %v369_v19 = vld [vmem:[%s1415_s5 + $0x20] sm:$0xff]  ;;  %v374_v32 = vld [vmem:[%s1415_s5 + $0x48] sm:$0xff]  ;;  %v392_v34 = vld [vmem:[%s1415_s5 + $0xd8] sm:$0xff] }
  0x3f   :  { %671 = vmatpush1.bf16.msra.mxu0 %v670_v48  ;;  %725 = vmatprep.subr.bf16.mxu1 %v724_v22  ;;  %v258_v48 = vld [vmem:[%s1413_s3 + $0x190] sm:$0xff]  ;;  %v388_v22 = vld [vmem:[%s1415_s5 + $0xb8] sm:$0xff]  ;;  %v393_v39 = vld [vmem:[%s1415_s5 + $0xe0] sm:$0xff] }
  0x40   :  { %673 = vmatprep.subr.bf16.mxu0 %v672_v53  ;;  %v738_v51 = vpack.c.bf16 %v258_v48, %v256_v47  ;;  %v260_v53 = vld [vmem:[%s1413_s3 + $0x1a0] sm:$0xff]  ;;  %v764_v24 = vpack.c.bf16 %v388_v22, %v387_v21  ;;  %v394_v40 = vld [vmem:[%s1415_s5 + $0xe8] sm:$0xff]  ;;  %v379_v4 = vld [vmem:[%s1415_s5 + $0x70] sm:$0xff] }
  0x41   :  { %v742_v57 = vpack.c.bf16 %v262_v54, %v260_v53  ;;  %v776_v42 = vpack.c.bf16 %v394_v40, %v393_v39  ;;  %v377_v62 = vld [vmem:[%s1415_s5 + $0x60] sm:$0xff]  ;;  %v378_v63 = vld [vmem:[%s1415_s5 + $0x68] sm:$0xff]  ;;  %v380_v5 = vld [vmem:[%s1415_s5 + $0x78] sm:$0xff] }
  0x42   :  { %727 = vmatpush1.bf16.msra.mxu1 %v726_v29 }
  0x43   :  { %675 = vmatpush1.bf16.msra.mxu0 %v674_v60  ;;  %729 = vmatprep.subr.bf16.mxu1 %v728_v31  ;;  %v266_v60 = vld [vmem:[%s1413_s3 + $0x1d0] sm:$0xff]  ;;  %v373_v31 = vld [vmem:[%s1415_s5 + $0x40] sm:$0xff] }
  0x44   :  { %677 = vmatprep.subr.bf16.mxu0 %v676_v1  ;;  %v746_v61 = vpack.c.bf16 %v266_v60, %v264_v59  ;;  %v268_v1 = vld [vmem:[%s1413_s3 + $0x1e0] sm:$0xff]  ;;  %v770_v35 = vpack.c.bf16 %v374_v32, %v373_v31 }
  0x45   :  { %v750_v3 = vpack.c.bf16 %v270_v2, %v268_v1  ;;  %v395_v1 = vld [vmem:[%s1415_s5 + $0xf0] sm:$0xff]  ;;  %v396_v2 = vld [vmem:[%s1415_s5 + $0xf8] sm:$0xff] }
  0x46   :  { %731 = vmatpush1.bf16.msra.mxu1 %v730_v36  ;;  %v772_v36 = vpack.c.bf16 %v392_v34, %v391_v33 }
  0x47   :  { %679 = vmatpush1.bf16.msra.mxu0 %v678_v8  ;;  %733 = vmatprep.subr.bf16.mxu1 %v732_v38  ;;  %v366_v8 = vld [vmem:[%s1415_s5 + $0x8] sm:$0xff]  ;;  %v376_v38 = vld [vmem:[%s1415_s5 + $0x58] sm:$0xff] }
  0x48   :  { %681 = vmatprep.subr.bf16.mxu0 %v680_v13  ;;  %v1300_v11 = vpack.c.bf16 %v366_v8, %v365_v6  ;;  %v367_v13 = vld [vmem:[%s1415_s5 + $0x10] sm:$0xff]  ;;  %v782_v6 = vpack.c.bf16 %v380_v5, %v379_v4 }
  0x49   :  { %v758_v17 = vpack.c.bf16 %v368_v14, %v367_v13 }
  0x4a   :  { %735 = vmatpush1.bf16.msra.mxu1 %v734_v44  ;;  %v118_v44 = vshrl.u32 %v117_v43, 7 }
  0x4b   :  { %683 = vmatpush1.bf16.msra.mxu0 %v682_v20  ;;  %737 = vmatprep.subr.bf16.mxu1 %v736_v46  ;;  %v370_v20 = vld [vmem:[%s1415_s5 + $0x28] sm:$0xff]  ;;  %v115_v46 = vld [vmem:[%s1412_s2] sm:$0x3] }
  0x4c   :  { %685 = vmatprep.subr.bf16.mxu0 %v684_v25  ;;  %v762_v23 = vpack.c.bf16 %v370_v20, %v369_v19  ;;  %v371_v25 = vld [vmem:[%s1415_s5 + $0x30] sm:$0xff]  ;;  %v123_v47 = vsub.s32 1, %v118_v44 }
  0x4d   :  { %v766_v29 = vpack.c.bf16 %v372_v26, %v371_v25 }
  0x4e   :  { %739 = vmatpush1.bf16.msra.mxu1 %v738_v51  ;;  %v124_v49 = vrot.slane %v115_v46, %v123_v47 }
  0x4f   :  { %687 = vmatpush1.bf16.msra.mxu0 %v686_v30  ;;  %741 = vmatprep.subr.bf16.mxu1 %v740_v52  ;;  %v768_v30 = vpack.c.bf16 %v390_v28, %v389_v27 }
  0x50   :  { %753 = vmatprep.subr.bf16.mxu0 %v752_v7 }
  0x52   :  { %192 = vmatmul.mubr.f32.vlgmr.msra.gmra.mrb[0].mxu0 %v47_v37  ;;  %743 = vmatpush1.bf16.msra.mxu1 %v742_v57  ;;  %v375_v37 = vld [vmem:[%s1415_s5 + $0x50] sm:$0xff]  ;;  %s585_s5 = sld [smem:[#allocation2 + $0x1]] }
  0x53   :  { %197 = vmatprep.mubr.f32.mxu0 %v50_v41  ;;  %745 = vmatprep.subr.bf16.mxu1 %v744_v58  ;;  %v774_v41 = vpack.c.bf16 %v376_v38, %v375_v37 }
  0x54   :  { %755 = vmatpush3.bf16.msra.mxu0 %v1300_v11 }
  0x55   :  { %757 = vmatprep.subr.bf16.mxu0 %v1302_v12 }
  0x56   :  { %198 = vmatmul.mubr.f32.gmra.mrb[2].mxu0 %v49_v45  ;;  %747 = vmatpush1.bf16.msra.mxu1 %v746_v61  ;;  %v119_v45 = vsub.s32 0, %v118_v44 }
  0x57   :  { %749 = vmatprep.subr.bf16.mxu1 %v748_v0  ;;  %v778_v0 = vpack.c.bf16 %v378_v63, %v377_v62 }
  0x58   :  { %759 = vmatpush3.bf16.msra.mxu0 %v758_v17  ;;  %v120_v48 = vrot.slane %v115_v46, %v119_v45  ;;  %v533_v31 = vstv %s585_s5 }
  0x59   :  { %761 = vmatprep.subr.bf16.mxu0 %v760_v18 }
  0x5a   :  { %751 = vmatpush1.bf16.msra.mxu1 %v750_v3  ;;  %v780_v3 = vpack.c.bf16 %v396_v2, %v395_v1 }
  0x5b   :  { %784 = vmatprep.subr.bf16.mxu1 %v752_v7  ;;  %v272_v7 = vld [vmem:[%s1414_s4] sm:$0x3]  ;;  %s532_s4 = sld [smem:[#allocation2]] }
  0x5c   :  { %763 = vmatpush3.bf16.msra.mxu0 %v762_v23  ;;  %v277_v8 = vrot.slane %v272_v7, %v119_v45  ;;  %v281_v9 = vrot.slane %v272_v7, %v123_v47 }
  0x5d   :  { %765 = vmatprep.subr.bf16.mxu0 %v764_v24 }
  0x60   :  { %767 = vmatpush3.bf16.msra.mxu0 %v766_v29 }
  0x61   :  { %769 = vmatprep.subr.bf16.mxu0 %v768_v30  ;;  %v534_v32 = vstv %s532_s4 }
  0x64   :  { %771 = vmatpush3.bf16.msra.mxu0 %v770_v35 }
  0x65   :  { %773 = vmatprep.subr.bf16.mxu0 %v772_v36 }
  0x68   :  { %775 = vmatpush3.bf16.msra.mxu0 %v774_v41 }
  0x69   :  { %777 = vmatprep.subr.bf16.mxu0 %v776_v42 }
  0x6c   :  { %779 = vmatpush3.bf16.msra.mxu0 %v778_v0 }
  0x6d   :  { %781 = vmatprep.subr.bf16.mxu0 %v780_v3 }
  0x70   :  { %783 = vmatpush3.bf16.msra.mxu0 %v782_v6 }
 0x125   :  { %v193_v50 = vpop.f32.mrb[0].mxu0 }
 0x126   :  { %v194_v51 = vadd.f32 %v193_v50, %v120_v48  ;;  %v195_v52 = vpop.f32.mrb[1].mxu0 }
 0x127   :  { %v196_v53 = vadd.f32 %v195_v52, %v124_v49 }
 0x128   :  { %v204_v56 = vmax.f32 %v194_v51, 0.0 }
 0x129   :  { %v199_v54 = vpop.f32.mrb[2].mxu0  ;;  %v205_v55 = vmax.f32 %v196_v53, 0.0 }
 0x12a   :  { %v200_v57 = vadd.f32 %v199_v54, %v120_v48  ;;  %v201_v58 = vpop.f32.mrb[3].mxu0 }
 0x12b   :  { %v202_v59 = vadd.f32 %v201_v58, %v124_v49  ;;  %348 = vmatprep.mubr.f32.mxu1 %v205_v55 }
 0x12c   :  { %349 = vmatmul.mubr.f32.vlgmr.msra.gmra.mrb[0].mxu1 %v204_v56  ;;  %v206_v61 = vmax.f32 %v200_v57, 0.0 }
 0x12d   :  { %v207_v60 = vmax.f32 %v202_v59, 0.0  ;;  %792 = vmatpush3.bf16.msra.mxu1 %v1300_v11 }
 0x12e   :  { %785 = vmatprep.subr.bf16.mxu1 %v1302_v12 }
 0x12f   :  { %354 = vmatprep.mubr.f32.mxu1 %v207_v60 }
 0x130   :  { %355 = vmatmul.mubr.f32.gmra.mrb[2].mxu1 %v206_v61 }
 0x131   :  { %793 = vmatpush3.bf16.msra.mxu1 %v758_v17 }
 0x132   :  { %786 = vmatprep.subr.bf16.mxu1 %v760_v18 }
 0x135   :  { %794 = vmatpush3.bf16.msra.mxu1 %v762_v23  ;;  %v492_v23 = vld [vmem:[%s1417_s7 + $0x8] sm:$0xff] }
 0x136   :  { %787 = vmatprep.subr.bf16.mxu1 %v764_v24  ;;  %v582_v24 = vld [vmem:[%s1416_s6] ss:$0 sm:$0xff]  ;;  %vm530_vm0 = vcmp.eq.s32.totalorder %v492_v23, 1  ;;  %v494_v43 = vmul.u32 2, %v492_v23 }
 0x137   :  { %v536_v34 = vsel %vm530_vm0, %v533_v31, %v534_v32 }
 0x138   :  { %v584_v45 = vadd.s32 4294967295, %v494_v43 }
 0x139   :  { %795 = vmatpush3.bf16.msra.mxu1 %v766_v29 }
 0x13a   :  { %788 = vmatprep.subr.bf16.mxu1 %v768_v30  ;;  %v491_v30 = vld [vmem:[%s1417_s7] sm:$0xff]  ;;  %s827_s7 = smov 127   ;;  %v498_v47 = vcvt.s32.f32 %v584_v45 }
 0x13b   :  { %vm529_vm1 = vcmp.eq.s32.totalorder %v491_v30, 1 }
 0x13c   :  { %v500_v50 = vsub.f32 0.0, %v498_v47 }
 0x13d   :  { %796 = vmatpush3.bf16.msra.mxu1 %v770_v35 }
 0x13e   :  { %789 = vmatprep.subr.bf16.mxu1 %v772_v36  ;;  %v535_v36 = vsel %vm529_vm1, %v533_v31, %v534_v32 }
 0x141   :  { %797 = vmatpush3.bf16.msra.mxu1 %v774_v41  ;;  %v493_v41 = vmul.u32 2, %v491_v30 }
 0x142   :  { %790 = vmatprep.subr.bf16.mxu1 %v776_v42 }
 0x143   :  { %v583_v42 = vadd.s32 4294967295, %v493_v41 }
 0x145   :  { %798 = vmatpush3.bf16.msra.mxu1 %v778_v0  ;;  %v497_v44 = vcvt.s32.f32 %v583_v42 }
 0x146   :  { %791 = vmatprep.subr.bf16.mxu1 %v780_v3 }
 0x147   :  { %v499_v46 = vsub.f32 0.0, %v497_v44 }
 0x149   :  { %799 = vmatpush3.bf16.msra.mxu1 %v782_v6 }
 0x1ff   :  { %v350_v10 = vpop.f32.mrb[0].mxu1 }
 0x200   :  { %v351_v11 = vadd.f32 %v350_v10, %v277_v8  ;;  %v352_v12 = vpop.f32.mrb[1].mxu1 }
 0x201   :  { %v353_v13 = vadd.f32 %v352_v12, %v281_v9 }
 0x202   :  { %v361_v16 = vmax.f32 %v351_v11, 0.0 }
 0x203   :  { %v362_v14 = vmax.f32 %v353_v13, 0.0  ;;  %v356_v15 = vpop.f32.mrb[2].mxu1 }
 0x204   :  { %v357_v17 = vadd.f32 %v356_v15, %v277_v8  ;;  %v358_v18 = vpop.f32.mrb[3].mxu1 }
 0x205   :  { %v359_v19 = vadd.f32 %v358_v18, %v281_v9  ;;  %468 = vmatprep.mubr.f32.mxu0 %v362_v14 }
 0x206   :  { %469 = vmatmul.mubr.f32.vlgmr.msra.gmra.mrb[4].mxu0 %v361_v16  ;;  %v363_v21 = vmax.f32 %v357_v17, 0.0 }
 0x207   :  { %v364_v20 = vmax.f32 %v359_v19, 0.0 }
 0x209   :  { %473 = vmatprep.mubr.f32.mxu1 %v364_v20 }
 0x20a   :  { %474 = vmatmul.mubr.f32.vlgmr.msra.gmra.mrb[4].mxu1 %v363_v21 }
 0x2d9   :  { %v618_v22 = vpop.f32.mrb[4].mxu0 }
 0x2da   :  { %v619_v25 = vpop.f32.mrb[5].mxu0 }
 0x2db   :  { %v620_v26 = vadd.f32 %v619_v25, %v618_v22 }
 0x2dd   :  { %v471_v27 = vadd.f32 %v620_v26, %v582_v24  ;;  %v621_v28 = vpop.f32.mrb[4].mxu1 }
 0x2de   :  { %v622_v29 = vpop.f32.mrb[5].mxu1 }
 0x2df   :  { %479 = vst [vmem:[%s1419_s9] sm:$0xff] %v471_v27  ;;  %v623_v33 = vadd.f32 %v622_v29, %v621_v28  ;;  %483 = vrot.lane.b32.xlu0 %v471_v27, %s826_s0 }
 0x2e1   :  { %v476_v35 = vadd.f32 %v623_v33, %v582_v24 }
 0x2e3   :  { %480 = vst [vmem:[%s1419_s9 + $0x8] sm:$0xff] %v476_v35  ;;  %485 = vrot.lane.b32.xlu0 %v476_v35, %s826_s0 }
 0x2e7   :  { %552 = vrot.lane.b32.xlu0 %v535_v36, %s826_s0 }
 0x351   :  { %v484_v37 = vpop.permute.xlu0 %483 }
 0x352   :  { %v489_v38 = vsub.f32 %v471_v27, %v484_v37 }
 0x354   :  { %503 = vrot.lane.b32.xlu1 %v489_v38, %s827_s7 }
 0x355   :  { %v486_v39 = vpop.permute.xlu0 %485 }
 0x356   :  { %v490_v40 = vsub.f32 %v476_v35, %v486_v39 }
 0x358   :  { %505 = vrot.lane.b32.xlu1 %v490_v40, %s827_s7 }
 0x359   :  { %v553_v7 = vpop.permute.xlu0 %552 }
 0x35c   :  { %554 = vrot.lane.b32.xlu1 %v536_v34, %s826_s0 }
 0x3c6   :  { %v504_v48 = vpop.permute.xlu1 %503 }
 0x3c7   :  { %v509_v49 = vmul.f32 %v504_v48, %v499_v46 }
 0x3c9   :  { %v513_v51 = vand.u32 2147483647, %v509_v49  ;;  %v511_v0 = vmax.f32 %v509_v49, 0.0 }
 0x3ca   :  { %v506_v52 = vpop.permute.xlu1 %505 }
 0x3cb   :  { %v515_v53 = vsub.f32 0.0, %v513_v51  ;;  %v510_v54 = vmul.f32 %v506_v52, %v500_v50 }
 0x3cd   :  { %v517_v55 = vmul.f32 1.442695, %v515_v53  ;;  %v514_v56 = vand.u32 2147483647, %v510_v54  ;;  %v512_v4 = vmax.f32 %v510_v54, 0.0 }
 0x3ce   :  { %v555_v9 = vpop.permute.xlu1 %554 }
 0x3cf   :  { %803 = vpow2.f32 %v517_v55  ;;  %v516_v57 = vsub.f32 0.0, %v514_v56 }
 0x3d1   :  { %v519_v58 = vmul.f32 1.442695, %v516_v57 }
 0x3d3   :  { %805 = vpow2.f32 %v519_v58 }
 0x3d9   :  { %v804_v59 = vpop.eup %803 }
 0x3da   :  { %v521_v60 = vadd.f32 1.0, %v804_v59 }
 0x3dc   :  { %807 = vlog2.f32 %v521_v60 }
 0x3dd   :  { %v806_v61 = vpop.eup %805 }
 0x3de   :  { %v522_v62 = vadd.f32 1.0, %v806_v61 }
 0x3e0   :  { %809 = vlog2.f32 %v522_v62 }
 0x3e6   :  { %v808_v63 = vpop.eup %807 }
 0x3e7   :  { %v524_v1 = vmul.f32 0.6931472, %v808_v63 }
 0x3e9   :  { %v527_v2 = vadd.f32 %v524_v1, %v511_v0 }
 0x3ea   :  { %v810_v3 = vpop.eup %809 }
 0x3eb   :  { %v526_v5 = vmul.f32 0.6931472, %v810_v3  ;;  %v548_v6 = vmul.f32 %v535_v36, %v527_v2 }
 0x3ed   :  { %v528_v8 = vadd.f32 %v526_v5, %v512_v4  ;;  %v559_v10 = vsel %vm558_vm2, %v548_v6, %v553_v7 }
 0x3ee   :  { %v562_v13 = vsel %vm561_vm3, %v559_v10, 0.0 }
 0x3ef   :  { %v549_v11 = vmul.f32 %v536_v34, %v528_v8 }
 0x3f1   :  { %v560_v12 = vsel %vm558_vm2, %v549_v11, %v555_v9 }
 0x3f2   :  { %v563_v14 = vsel %vm561_vm3, %v560_v12, 0.0 }
 0x3f3   :  { %v564_v15 = vadd.f32 %v563_v14, %v562_v13 }
 0x3f5   :  { %v565_v16 = vrot.slane %v564_v15, 4 }
 0x3f7   :  { %v566_v17 = vadd.f32 %v565_v16, %v564_v15 }
 0x3f9   :  { %v567_v18 = vrot.slane %v566_v17, 2 }
 0x3fb   :  { %v568_v19 = vadd.f32 %v567_v18, %v566_v17 }
 0x3fd   :  { %v569_v20 = vrot.slane %v568_v19, 1 }
 0x3ff   :  { %v570_v21 = vadd.f32 %v569_v20, %v568_v19 }
 0x401   :  { %572 = vst.msk [vmem:[%s1420_s10] sm:$0x1] %vm571_vm4, %v570_v21 }
 0x402   :  { %581 = vsyncpa [#allocation3], 1 }

</bundles_post_ra>
